<compile_context>
chip_gen: v6e
topology: v6e:2x2x1
jax: 0.10.0
libtpu: 0.0.40
codegen_flags: <defaults>
</compile_context>

<pallas_src>
import math
import numpy as np

import jax
import jax.numpy as jnp
from jax import lax
from jax.experimental import pallas as pl
from jax.experimental.pallas import tpu as pltpu

KSIZE = 11
SIGMA = 1.5
SSIM_C1 = 0.01 ** 2
SSIM_C2 = 0.03 ** 2

# Use the Kronecker (single-matmul) path while the dense (H*W, H*W) operator
# stays small (<= 4 MiB); beyond that fall back to the separable path.
KRON_MAX_HW = 1024


# ----------------------------------------------------------------------------
# Gaussian window / conv operators (host-side, compile-time constants)
# ----------------------------------------------------------------------------
def _gaussian_1d(ksize=KSIZE, sigma=SIGMA):
    """Normalized 1D Gaussian taps, identical to torch gaussian()."""
    g = np.array(
        [math.exp(-((x - ksize // 2) ** 2) / float(2 * sigma ** 2)) for x in range(ksize)],
        dtype=np.float64,
    )
    return g / g.sum()


def create_window_np(ksize=KSIZE, sigma=SIGMA):
    """2D Gaussian window (used by the pure-JAX reference)."""
    g = _gaussian_1d(ksize, sigma)
    return np.outer(g, g).astype(np.float32)


def _banded_gaussian_matrix(n, ksize=KSIZE, sigma=SIGMA):
    """(n, n) operator G with (G @ x)[i] = zero-padded 1D Gaussian conv at i."""
    g = _gaussian_1d(ksize, sigma)
    pad = ksize // 2
    G = np.zeros((n, n), dtype=np.float64)
    for i in range(n):
        for d in range(-pad, pad + 1):
            k = i + d
            if 0 <= k < n:
                G[i, k] = g[d + pad]
    return G


def _kron_operator(H, W, ksize=KSIZE, sigma=SIGMA):
    """(H*W, H*W) f32 matrix K with  x_flat_row @ K == flatten(conv2d(x))."""
    GH = _banded_gaussian_matrix(H, ksize, sigma)
    GW = _banded_gaussian_matrix(W, ksize, sigma)
    # Column form: o_flat = kron(GH, GW) @ x_flat, so the row form uses the
    # transpose.  (It happens to be symmetric for the symmetric Gaussian, but
    # the explicit transpose keeps the operator correct for any window.)
    return np.kron(GH, GW).T.astype(np.float32)


# ----------------------------------------------------------------------------
# Kernels
# ----------------------------------------------------------------------------
def _ssim_elementwise(mu1, mu2, s11, s22, s12):
    mu1_sq = mu1 * mu1
    mu2_sq = mu2 * mu2
    mu1_mu2 = mu1 * mu2
    sigma1_sq = s11 - mu1_sq
    sigma2_sq = s22 - mu2_sq
    sigma12 = s12 - mu1_mu2
    num = (2.0 * mu1_mu2 + SSIM_C1) * (2.0 * sigma12 + SSIM_C2)
    den = (mu1_sq + mu2_sq + SSIM_C1) * (sigma1_sq + sigma2_sq + SSIM_C2)
    # EUP reciprocal keeps the divide off the VALU path; the approximation
    # error (~1e-4 relative) is far below the SSIM comparison tolerance.
    return num * pl.reciprocal(den, approx=True)


def _make_kron_kernel(tile_bc, hw):
    """All five convs of a (tile_bc, hw) tile via the (hw, hw) Kronecker operator."""
    # Fuse the five convs into one MXU matmul when the stacked offsets are
    # sublane-aligned; for tiny unaligned tiles fall back to five clean matmuls.
    fuse = (tile_bc % 8) == 0

    def kernel(k_ref, p_ref, t_ref, out_ref):
        # k_ref: (hw, hw) f32 conv operator (resident across the grid).
        # p_ref / t_ref: (tile_bc, hw) lane-dense image tiles, native dtype.
        # out_ref: (1, 1, hw) lane-dense per-tile partial sums.
        p = p_ref[...].astype(jnp.float32)
        t = t_ref[...].astype(jnp.float32)
        k = k_ref[...]

        if fuse:
            slab = jnp.concatenate([p, t, p * p, t * t, p * t], axis=0)  # (5*tile_bc, hw)
            conv = jnp.dot(slab, k, preferred_element_type=jnp.float32)
            mu1 = conv[0 * tile_bc:1 * tile_bc]
            mu2 = conv[1 * tile_bc:2 * tile_bc]
            s11 = conv[2 * tile_bc:3 * tile_bc]
            s22 = conv[3 * tile_bc:4 * tile_bc]
            s12 = conv[4 * tile_bc:5 * tile_bc]
        else:
            c = lambda x: jnp.dot(x, k, preferred_element_type=jnp.float32)
            mu1, mu2 = c(p), c(t)
            s11, s22, s12 = c(p * p), c(t * t), c(p * t)

        ssim_map = _ssim_elementwise(mu1, mu2, s11, s22, s12)
        # Sublane-only reduce; the cheap cross-lane reduce happens once in the
        # wrapper over all per-tile partials.
        out_ref[...] = jnp.sum(ssim_map, axis=0, keepdims=True).reshape(1, 1, hw)

    return kernel


def _make_separable_kernel(tile_bc, H, W):
    """Separable path: flattened W-pass matmul + batched H-pass matmul."""
    dn = (((2,), (1,)), ((0,), (0,)))  # batched: contract lhs[-1] with rhs dim 1

    def kernel(gh_ref, gwt_ref, p_ref, t_ref, out_ref):
        # gh_ref: (H, H) left conv operator; gwt_ref: (W, W) transposed right operator.
        p = p_ref[...].astype(jnp.float32)        # (tile_bc, H, W)
        t = t_ref[...].astype(jnp.float32)
        gh = gh_ref[...]
        gwt = gwt_ref[...]

        m = 5 * tile_bc
        # Stack along the untiled leading axis (always layout-safe).
        slab = jnp.concatenate([p, t, p * p, t * t, p * t], axis=0)   # (m, H, W)

        # W pass: ONE flattened (m*H, W) @ (W, W) MXU matmul.
        y = jnp.dot(slab.reshape(m * H, W), gwt,
                    preferred_element_type=jnp.float32).reshape(m, H, W)
        # H pass: batched G_H @ y (single hoisted broadcast of G_H).
        ghb = jnp.broadcast_to(gh[None, :, :], (m, H, H))
        z = lax.dot_general(ghb, y, dn, preferred_element_type=jnp.float32)

        mu1 = z[0 * tile_bc:1 * tile_bc]
        mu2 = z[1 * tile_bc:2 * tile_bc]
        s11 = z[2 * tile_bc:3 * tile_bc]
        s22 = z[3 * tile_bc:4 * tile_bc]
        s12 = z[4 * tile_bc:5 * tile_bc]

        ssim_map = _ssim_elementwise(mu1, mu2, s11, s22, s12)
        out_ref[...] = jnp.sum(ssim_map, axis=(0, 1), keepdims=True)  # (1, 1, W)

    return kernel


# ----------------------------------------------------------------------------
# VMEM model / tiling
# ----------------------------------------------------------------------------
def _vmem_capacity_bytes():
    """Physical VMEM per TensorCore; falls back to the v7x-safe 64 MiB."""
    try:
        return int(pltpu.get_tpu_info().vmem_capacity_bytes)
    except Exception:
        return 64 * 1024 * 1024


def _vmem_budget_and_limit():
    cap = _vmem_capacity_bytes()
    # v7x has only 64 MiB/TC -> stay near 40 MiB; v5e/v6e (128 MiB) can go bigger.
    budget = (40 << 20) if cap <= (64 << 20) else (80 << 20)
    limit = int(min(cap - (4 << 20), budget + (16 << 20)))
    return budget, limit


def _pick_tile_bc(bc, per_bc_bytes, const_bytes, budget_bytes, max_tile_bc, align):
    """Largest divisor of bc whose modeled working set fits the VMEM budget.

    `align` is the sublane alignment required of a partial tile (the full-bc
    tile is always acceptable).  Returns None if nothing fits.
    """
    cap = (budget_bytes - const_bytes) // per_bc_bytes
    if max_tile_bc is not None:
        cap = min(cap, max_tile_bc)
    best = None
    for d in range(1, bc + 1):
        if bc % d == 0 and d <= cap and (d == bc or d % align == 0):
            best = d
    return best


# ----------------------------------------------------------------------------
# Public wrapper
# ----------------------------------------------------------------------------
def ssim_loss(pred, targ, ksize=KSIZE, size_average=True, max_tile_bc=None,
              force_separable=False):
    """1 - SSIM(pred, targ), matching SSIMLoss.forward (size_average=True)."""
    # TODO(synk): size_average=False (per-sample mean) path not implemented.
    assert size_average, "only size_average=True is implemented"
    B, C, H, W = pred.shape
    bc = B * C
    hw = H * W
    esize = pred.dtype.itemsize

    budget, vmem_limit = _vmem_budget_and_limit()
    compiler_params = pltpu.CompilerParams(
        dimension_semantics=("parallel",),   # independent per-tile partial sums
        vmem_limit_bytes=vmem_limit,
    )
    # NOTE: input BlockSpecs keep the default double-buffering; bump to
    # pl.Buffered(3) only if a trace shows exposed DMA after tile_bc sizing.

    use_kron = (hw <= KRON_MAX_HW) and not force_separable
    tile_bc = None
    if use_kron:
        # Per-channel working set: 2 inputs x 2 pipeline buffers (native dtype)
        # + ~26 live f32 (1, hw) rows (slab, conv, slices, elementwise temps).
        per_bc = hw * (4 * esize + 26 * 4)
        const = 2 * hw * hw * 4            # resident conv operator buffers
        pack = 32 // esize                 # sublane packing of the input dtype
        tile_bc = _pick_tile_bc(bc, per_bc, const, budget, max_tile_bc, align=pack)
        if tile_bc is None:
            use_kron = False               # fall back to the separable path

    if use_kron:
        kmat = jnp.asarray(_kron_operator(H, W, ksize))
        p = pred.reshape(bc, hw)           # free row-major reshape, native dtype
        t = targ.reshape(bc, hw)
        num_tiles = bc // tile_bc
        partials = pl.pallas_call(
            _make_kron_kernel(tile_bc, hw),
            out_shape=jax.ShapeDtypeStruct((num_tiles, 1, hw), jnp.float32),
            grid=(num_tiles,),
            in_specs=[
                pl.BlockSpec((hw, hw), lambda i: (0, 0)),        # conv operator
                pl.BlockSpec((tile_bc, hw), lambda i: (i, 0)),   # pred tile
                pl.BlockSpec((tile_bc, hw), lambda i: (i, 0)),   # targ tile
            ],
            out_specs=pl.BlockSpec((1, 1, hw), lambda i: (i, 0, 0)),
            compiler_params=compiler_params,
        )(kmat, p, t)
    else:
        # TODO(synk): band-block G_H/G_W (11-tap band) for very large H/W to
        # avoid dense O(W^2) MACs on v5e's smaller MXU.
        gh = jnp.asarray(_banded_gaussian_matrix(H, ksize).astype(np.float32))
        gwt = jnp.asarray(_banded_gaussian_matrix(W, ksize).T.astype(np.float32))
        # Per-channel working set: double-buffered native inputs + ~30 live f32
        # (H, W) slabs + the 5x per-channel broadcast of G_H for the H pass.
        per_bc = hw * (4 * esize + 30 * 4) + 5 * H * H * 4
        const = 2 * (H * H + W * W) * 4
        tile_bc = _pick_tile_bc(bc, per_bc, const, budget, max_tile_bc, align=1) or 1
        p = pred.reshape(bc, H, W)
        t = targ.reshape(bc, H, W)
        num_tiles = bc // tile_bc
        partials = pl.pallas_call(
            _make_separable_kernel(tile_bc, H, W),
            out_shape=jax.ShapeDtypeStruct((num_tiles, 1, W), jnp.float32),
            grid=(num_tiles,),
            in_specs=[
                pl.BlockSpec((H, H), lambda i: (0, 0)),             # G_H
                pl.BlockSpec((W, W), lambda i: (0, 0)),             # G_W^T
                pl.BlockSpec((tile_bc, H, W), lambda i: (i, 0, 0)),  # pred tile
                pl.BlockSpec((tile_bc, H, W), lambda i: (i, 0, 0)),  # targ tile
            ],
            out_specs=pl.BlockSpec((1, 1, W), lambda i: (i, 0, 0)),
            compiler_params=compiler_params,
        )(gh, gwt, p, t)

    return 1.0 - jnp.sum(partials) / (bc * H * W)


# ----------------------------------------------------------------------------
# Pure-JAX reference (mirrors the PyTorch code) and tests
# ----------------------------------------------------------------------------
def ssim_loss_ref(pred, targ, ksize=KSIZE):
    B, C, H, W = pred.shape
    pad = ksize // 2
    w2d = jnp.asarray(create_window_np(ksize))
    win = jnp.broadcast_to(w2d, (C, 1, ksize, ksize)).astype(jnp.float32)

    def conv(x):
        return lax.conv_general_dilated(
            x.astype(jnp.float32), win,
            window_strides=(1, 1), padding=[(pad, pad), (pad, pad)],
            dimension_numbers=("NCHW", "OIHW", "NCHW"),
            feature_group_count=C, precision=lax.Precision.HIGHEST)

    mu1, mu2 = conv(pred), conv(targ)
    mu1_sq, mu2_sq, mu1_mu2 = mu1 * mu1, mu2 * mu2, mu1 * mu2
    sigma1_sq = conv(pred * pred) - mu1_sq
    sigma2_sq = conv(targ * targ) - mu2_sq
    sigma12 = conv(pred * targ) - mu1_mu2
    ssim_map = ((2 * mu1_mu2 + SSIM_C1) * (2 * sigma12 + SSIM_C2)) / (
        (mu1_sq + mu2_sq + SSIM_C1) * (sigma1_sq + sigma2_sq + SSIM_C2))
    return 1.0 - jnp.mean(ssim_map)


if __name__ == "__main__":
    key = jax.random.PRNGKey(0)
    k1, k2, k3, k4, k5, k6 = jax.random.split(key, 6)

    # Case 1: SSIMLoss module default (channel = 1), Kronecker path, one tile.
    pred1 = jax.random.uniform(k1, (2, 1, 16, 16), dtype=jnp.float32)
    targ1 = jax.random.uniform(k2, (2, 1, 16, 16), dtype=jnp.float32)
    loss1 = jax.block_until_ready(ssim_loss(pred1, targ1))
    ref1 = jax.block_until_ready(ssim_loss_ref(pred1, targ1))
    assert abs(float(loss1) - float(ref1)) < 2e-3, (float(loss1), float(ref1))

    # Case 2: multi-channel input with a forced multi-tile grid (tile_bc = 8),
    # exercising the "parallel" per-tile partial-sum path and the fused matmul.
    pred2 = jax.random.uniform(k3, (4, 4, 16, 16), dtype=jnp.float32)
    targ2 = jax.random.uniform(k4, (4, 4, 16, 16), dtype=jnp.float32)
    loss2 = jax.block_until_ready(ssim_loss(pred2, targ2, max_tile_bc=8))
    ref2 = jax.block_until_ready(ssim_loss_ref(pred2, targ2))
    assert abs(float(loss2) - float(ref2)) < 2e-3, (float(loss2), float(ref2))

    # Case 3: the separable (large-image) path, forced at a small shape.
    pred3 = jax.random.uniform(k5, (2, 2, 16, 16), dtype=jnp.float32)
    targ3 = jax.random.uniform(k6, (2, 2, 16, 16), dtype=jnp.float32)
    loss3 = jax.block_until_ready(ssim_loss(pred3, targ3, force_separable=True))
    ref3 = jax.block_until_ready(ssim_loss_ref(pred3, targ3))
    assert abs(float(loss3) - float(ref3)) < 2e-3, (float(loss3), float(ref3))

    print("KERNEL_OK")
</pallas_src>

<mosaic_0001>
module attributes {stable_mosaic.version = 11 : i64} {
  func.func @kernel(%arg0: i32, %arg1: memref<256x256xf32, #tpu.memory_space<vmem>>, %arg2: memref<2x256xf32, #tpu.memory_space<vmem>>, %arg3: memref<2x256xf32, #tpu.memory_space<vmem>>, %arg4: memref<1x1x256xf32, #tpu.memory_space<vmem>>) attributes {dimension_semantics = [#tpu.dimension_semantics<parallel>], iteration_bounds = array<i64: 1>, scalar_prefetch = 0 : i64, scratch_operands = 0 : i64, tpu.core_type = #tpu.core_type<tc>, window_params = [{pipeline_mode = #tpu.pipeline_mode<synchronous>, transform_indices = @transform_0, window_bounds = array<i64: 256, 256>}, {transform_indices = @transform_1, window_bounds = array<i64: 2, 256>}, {transform_indices = @transform_2, window_bounds = array<i64: 2, 256>}, {transform_indices = @transform_3, window_bounds = array<i64: 1, 1, 256>}]} {
    %c0 = arith.constant 0 : index
    %c0_0 = arith.constant 0 : index
    %0 = vector.load %arg2[%c0, %c0_0] : memref<2x256xf32, #tpu.memory_space<vmem>>, vector<2x256xf32>
    %c0_1 = arith.constant 0 : index
    %c0_2 = arith.constant 0 : index
    %1 = vector.load %arg3[%c0_1, %c0_2] : memref<2x256xf32, #tpu.memory_space<vmem>>, vector<2x256xf32>
    %c0_3 = arith.constant 0 : index
    %c0_4 = arith.constant 0 : index
    %2 = vector.load %arg1[%c0_3, %c0_4] : memref<256x256xf32, #tpu.memory_space<vmem>>, vector<256x256xf32>
    %cst = arith.constant dense<0.000000e+00> : vector<2x256xf32>
    %3 = tpu.matmul %0, %2, %cst {dimension_numbers = #tpu.dot_dimension_numbers<[1], [0], [0], [1], [0, 0, 1, 1], [], []>} : vector<2x256xf32>, vector<256x256xf32>, vector<2x256xf32> -> vector<2x256xf32>
    %cst_5 = arith.constant dense<0.000000e+00> : vector<2x256xf32>
    %4 = tpu.matmul %1, %2, %cst_5 {dimension_numbers = #tpu.dot_dimension_numbers<[1], [0], [0], [1], [0, 0, 1, 1], [], []>} : vector<2x256xf32>, vector<256x256xf32>, vector<2x256xf32> -> vector<2x256xf32>
    %5 = arith.mulf %0, %0 : vector<2x256xf32>
    %cst_6 = arith.constant dense<0.000000e+00> : vector<2x256xf32>
    %6 = tpu.matmul %5, %2, %cst_6 {dimension_numbers = #tpu.dot_dimension_numbers<[1], [0], [0], [1], [0, 0, 1, 1], [], []>} : vector<2x256xf32>, vector<256x256xf32>, vector<2x256xf32> -> vector<2x256xf32>
    %7 = arith.mulf %1, %1 : vector<2x256xf32>
    %cst_7 = arith.constant dense<0.000000e+00> : vector<2x256xf32>
    %8 = tpu.matmul %7, %2, %cst_7 {dimension_numbers = #tpu.dot_dimension_numbers<[1], [0], [0], [1], [0, 0, 1, 1], [], []>} : vector<2x256xf32>, vector<256x256xf32>, vector<2x256xf32> -> vector<2x256xf32>
    %9 = arith.mulf %0, %1 : vector<2x256xf32>
    %cst_8 = arith.constant dense<0.000000e+00> : vector<2x256xf32>
    %10 = tpu.matmul %9, %2, %cst_8 {dimension_numbers = #tpu.dot_dimension_numbers<[1], [0], [0], [1], [0, 0, 1, 1], [], []>} : vector<2x256xf32>, vector<256x256xf32>, vector<2x256xf32> -> vector<2x256xf32>
    %11 = arith.mulf %3, %3 : vector<2x256xf32>
    %12 = arith.mulf %4, %4 : vector<2x256xf32>
    %13 = arith.mulf %3, %4 : vector<2x256xf32>
    %14 = arith.subf %6, %11 : vector<2x256xf32>
    %15 = arith.subf %8, %12 : vector<2x256xf32>
    %16 = arith.subf %10, %13 : vector<2x256xf32>
    %cst_9 = arith.constant 2.000000e+00 : f32
    %17 = vector.broadcast %cst_9 : f32 to vector<2x256xf32>
    %18 = arith.mulf %17, %13 : vector<2x256xf32>
    %cst_10 = arith.constant 9.99999974E-5 : f32
    %19 = vector.broadcast %cst_10 : f32 to vector<2x256xf32>
    %20 = arith.addf %18, %19 : vector<2x256xf32>
    %cst_11 = arith.constant 2.000000e+00 : f32
    %21 = vector.broadcast %cst_11 : f32 to vector<2x256xf32>
    %22 = arith.mulf %21, %16 : vector<2x256xf32>
    %cst_12 = arith.constant 8.99999984E-4 : f32
    %23 = vector.broadcast %cst_12 : f32 to vector<2x256xf32>
    %24 = arith.addf %22, %23 : vector<2x256xf32>
    %25 = arith.mulf %20, %24 : vector<2x256xf32>
    %26 = arith.addf %11, %12 : vector<2x256xf32>
    %cst_13 = arith.constant 9.99999974E-5 : f32
    %27 = vector.broadcast %cst_13 : f32 to vector<2x256xf32>
    %28 = arith.addf %26, %27 : vector<2x256xf32>
    %29 = arith.addf %14, %15 : vector<2x256xf32>
    %cst_14 = arith.constant 8.99999984E-4 : f32
    %30 = vector.broadcast %cst_14 : f32 to vector<2x256xf32>
    %31 = arith.addf %29, %30 : vector<2x256xf32>
    %32 = arith.mulf %28, %31 : vector<2x256xf32>
    %33 = tpu.reciprocal %32 {approx = true} : vector<2x256xf32> -> vector<2x256xf32>
    %34 = arith.mulf %25, %33 : vector<2x256xf32>
    %cst_15 = arith.constant dense<0.000000e+00> : vector<256xf32>
    %35 = vector.multi_reduction <add>, %34, %cst_15 [0] : vector<2x256xf32> to vector<256xf32>
    %36 = vector.shape_cast %35 : vector<256xf32> to vector<1x256xf32>
    %37 = vector.shape_cast %36 : vector<1x256xf32> to vector<1x1x256xf32>
    %c0_16 = arith.constant 0 : index
    %c0_17 = arith.constant 0 : index
    %c0_18 = arith.constant 0 : index
    %38 = vector.load %arg4[%c0_16, %c0_17, %c0_18] : memref<1x1x256xf32, #tpu.memory_space<vmem>>, vector<1x1x256xf32>
    tpu.vector_store %arg4[%c0_16, %c0_17, %c0_18], %37 {strides = array<i32>} : memref<1x1x256xf32, #tpu.memory_space<vmem>>, vector<1x1x256xf32>,
    return
  }
  func.func @transform_0(%arg0: i32) -> (i32, i32) {
    %c0_i32 = arith.constant 0 : i32
    %c0_i32_0 = arith.constant 0 : i32
    %c0_i32_1 = arith.constant 0 : i32
    return %c0_i32, %c0_i32_0 : i32, i32
  }
  func.func @transform_1(%arg0: i32) -> (i32, i32) {
    %c0_i32 = arith.constant 0 : i32
    %c0_i32_0 = arith.constant 0 : i32
    return %arg0, %c0_i32 : i32, i32
  }
  func.func @transform_2(%arg0: i32) -> (i32, i32) {
    %c0_i32 = arith.constant 0 : i32
    %c0_i32_0 = arith.constant 0 : i32
    return %arg0, %c0_i32 : i32, i32
  }
  func.func @transform_3(%arg0: i32) -> (i32, i32, i32) {
    %c0_i32 = arith.constant 0 : i32
    %c0_i32_0 = arith.constant 0 : i32
    %c0_i32_1 = arith.constant 0 : i32
    return %arg0, %c0_i32, %c0_i32_0 : i32, i32, i32
  }
}

</mosaic_0001>

<bundles_post_ra>
// kernel: tpu_custom_call.1
= control target key start
LH: loop header
LB: loop body
LE: loop exit
PB: predicated region body
PF: predicated region fallthrough
CT: control target
= control target key end

     0   :  { %8 = vsyncpa [#allocation3], 0  ;;  %s1250_s0 = inlined_call_operand.hbm [shape: f32[256,256], index: 0, kind: input, shape index: {}]   ;;  %s1251_s1 = inlined_call_operand.hbm [shape: f32[2,256], index: 1, kind: input, shape index: {}]   ;;  %s1252_s2 = inlined_call_operand.hbm [shape: f32[2,256], index: 2, kind: input, shape index: {}]   ;;  %s1253_s3 = inlined_call_operand.hbm [shape: f32[1,1,256], index: 3, kind: output, shape index: {}]  }
   0x1   :  { %9 = vsyncpa [#allocation6], 0 }
   0x2   :  { %10 = vsyncpa [#allocation4], 0  ;;  %s719_s12 = smov [#allocation5]   ;;  %s720_s14 = smov [#allocation2]  }
   0x3   :  { %s29_s13 = sshll.u32 %s719_s12, 4  ;;  %s16_s15 = sshll.u32 %s720_s14, 4  ;;  %s30_s13 = int_to_ptr.vmem [resolvable:$true] %s29_s13  ;;  %s17_s15 = int_to_ptr.vmem [resolvable:$true] %s16_s15 }
   0x4   :  { %s641_s16 = scalar_lea.vmem %s30_s13, 64  ;;  %p646_p1 = scmp.lt.s32.totalorder %s30_s13, %s30_s13 }
   0x5   :  { %p642_p0 = scmp.ne.s32.totalorder %s30_s13, %s641_s16  ;;  %p647_p2 = scmp.lt.s32.totalorder %s641_s16, %s641_s16 }
   0x7   :  { %p648_p3 = por %p647_p2, %p646_p1 }
   0x9   :  { %p649_p4 = pnand %p648_p3, %p642_p0 }
   0xb   :  { %652 = shalt.err (!%p649_p4)
}
   0xc   :  { %32 = dma.hbm_to_vmem [thread:$0]  %s1251_s1, 64, %s30_s13, [#allocation6]  }
   0xd   :  { %s661_s19 = scalar_lea.vmem %s17_s15, 8192  ;;  %p666_p6 = scmp.lt.s32.totalorder %s17_s15, %s17_s15 }
   0xe   :  { %p662_p5 = scmp.ne.s32.totalorder %s17_s15, %s661_s19  ;;  %p667_p7 = scmp.lt.s32.totalorder %s661_s19, %s661_s19 }
  0x10   :  { %p668_p8 = por %p667_p7, %p666_p6 }
  0x12   :  { %p669_p9 = pnand %p668_p8, %p662_p5 }
  0x14   :  { %672 = shalt.err (!%p669_p9)
}
  0x15   :  { %s721_s20 = smov 256   ;;  %s722_s21 = smov 16  }
  0x16   :  { %22 = dma.hbm_to_vmem [thread:$0]  %s1250_s0, 8192, %s17_s15, [#allocation3], %s721_s20, %s721_s20, %s722_s21  }
  0x17   :  { %s723_s24 = smov [#allocation7]  }
  0x18   :  { %s39_s25 = sshll.u32 %s723_s24, 4  ;;  %s40_s25 = int_to_ptr.vmem [resolvable:$true] %s39_s25 }
  0x19   :  { %s681_s26 = scalar_lea.vmem %s40_s25, 64  ;;  %p686_p11 = scmp.lt.s32.totalorder %s40_s25, %s40_s25 }
  0x1a   :  { %p682_p10 = scmp.ne.s32.totalorder %s40_s25, %s681_s26  ;;  %p687_p12 = scmp.lt.s32.totalorder %s681_s26, %s681_s26 }
  0x1c   :  { %p688_p13 = por %p687_p12, %p686_p11 }
  0x1e   :  { %p689_p0 = pnand %p688_p13, %p682_p10 }
  0x20   :  { %692 = shalt.err (!%p689_p0)
}
  0x21   :  { %42 = dma.hbm_to_vmem [thread:$0]  %s1252_s2, 64, %s40_s25, [#allocation6]  }
  0x22   :  { %713 = dma.done.wait [#allocation3], 8192  }
  0x23   :  { %714 = vsyncadd [#allocation3], 4294959104 }
  0x24   :  { %715 = dma.done.wait [#allocation6], 128  }
  0x25   :  { %716 = vsyncadd [#allocation6], 4294967168  ;;  %v756_v0 = vld [vmem:[#allocation2 + $0xf8] sm:$0xff]  ;;  %v758_v1 = vld [vmem:[#allocation2 + $0xf0] sm:$0xff]  ;;  %v724_v17 = vmov 1983009808   ;;  %v1254_v19 = vlaneseq }
  0x26   :  { %v760_v2 = vld [vmem:[#allocation2 + $0xe8] sm:$0xff]  ;;  %129 = vmatprep.subr.mxu0 %v756_v0  ;;  %211 = vmatprep.subr.mxu1 %v756_v0  ;;  %v764_v3 = vld [vmem:[#allocation2 + $0xe0] sm:$0xff]  ;;  %v768_v4 = vld [vmem:[#allocation2 + $0xd8] sm:$0xff]  ;;  %v120_v18 = vunpack.c.l.s4 %v724_v17  ;;  %vm567_vm0 = vcmask 1041408   ;;  %s726_s0 = smov [#allocation8]  }
  0x27   :  { %130 = vmatpush1.msra.mxu0 %v758_v1  ;;  %212 = vmatpush1.msra.mxu1 %v758_v1  ;;  %v772_v5 = vld [vmem:[#allocation2 + $0xd0] sm:$0xff]  ;;  %v776_v6 = vld [vmem:[#allocation2 + $0xc8] sm:$0xff]  ;;  %v780_v7 = vld [vmem:[#allocation2 + $0xc0] sm:$0xff]  ;;  %v835_v25 = vshrl.u32 %v1254_v19, 7  ;;  %s611_s2 = sshll.u32 %s726_s0, 4  ;;  %s612_s2 = int_to_ptr.vmem [resolvable:$true] %s611_s2 }
  0x28   :  { %131 = vmatprep.subr.mxu0 %v760_v2  ;;  %213 = vmatprep.subr.mxu1 %v760_v2  ;;  %v784_v8 = vld [vmem:[#allocation2 + $0xb8] sm:$0xff]  ;;  %v788_v9 = vld [vmem:[#allocation2 + $0xb0] sm:$0xff]  ;;  %v792_v10 = vld [vmem:[#allocation2 + $0xa8] sm:$0xff]  ;;  %v121_v24 = vunpack.c.0.s8 %v120_v18  ;;  %s693_s28 = scalar_lea.vmem %s612_s2, 32  ;;  %p698_p2 = scmp.lt.s32.totalorder %s612_s2, %s612_s2 }
  0x29   :  { %132 = vmatpush1.msra.mxu0 %v764_v3  ;;  %214 = vmatpush1.msra.mxu1 %v764_v3  ;;  %v796_v11 = vld [vmem:[#allocation2 + $0xa0] sm:$0xff]  ;;  %v800_v12 = vld [vmem:[#allocation2 + $0x98] sm:$0xff]  ;;  %v804_v13 = vld [vmem:[#allocation2 + $0x90] sm:$0xff]  ;;  %1278 = vst [vmem:[#allocation12_spill] sm:$0xff] %v835_v25  ;;  %p694_p1 = scmp.ne.s32.totalorder %s612_s2, %s693_s28  ;;  %p699_p3 = scmp.lt.s32.totalorder %s693_s28, %s693_s28 }
  0x2a   :  { %133 = vmatprep.subr.mxu0 %v768_v4  ;;  %215 = vmatprep.subr.mxu1 %v768_v4  ;;  %v808_v14 = vld [vmem:[#allocation2 + $0x88] sm:$0xff]  ;;  %v812_v15 = vld [vmem:[#allocation2 + $0x80] sm:$0xff]  ;;  %v816_v16 = vld [vmem:[#allocation2 + $0x78] sm:$0xff]  ;;  %v856_v31 = vsub.s32 %v121_v24, %v835_v25 }
  0x2b   :  { %134 = vmatpush1.msra.mxu0 %v772_v5  ;;  %216 = vmatpush1.msra.mxu1 %v772_v5  ;;  %v820_v20 = vld [vmem:[#allocation2 + $0x70] sm:$0xff]  ;;  %v824_v21 = vld [vmem:[#allocation2 + $0x68] sm:$0xff]  ;;  %v828_v22 = vld [vmem:[#allocation2 + $0x60] sm:$0xff]  ;;  %p700_p4 = por %p699_p3, %p698_p2 }
  0x2c   :  { %135 = vmatprep.subr.mxu0 %v776_v6  ;;  %217 = vmatprep.subr.mxu1 %v776_v6  ;;  %v832_v23 = vld [vmem:[#allocation2 + $0x58] sm:$0xff]  ;;  %v839_v26 = vld [vmem:[#allocation2 + $0x50] sm:$0xff]  ;;  %v843_v27 = vld [vmem:[#allocation2 + $0x48] sm:$0xff] }
  0x2d   :  { %136 = vmatpush1.msra.mxu0 %v780_v7  ;;  %218 = vmatpush1.msra.mxu1 %v780_v7  ;;  %v847_v28 = vld [vmem:[#allocation2 + $0x40] sm:$0xff]  ;;  %v853_v30 = vld [vmem:[#allocation2 + $0x38] sm:$0xff]  ;;  %v864_v34 = vld [vmem:[#allocation2 + $0x30] sm:$0xff]  ;;  %p701_p5 = pnand %p700_p4, %p694_p1 }
  0x2e   :  { %137 = vmatprep.subr.mxu0 %v784_v8  ;;  %219 = vmatprep.subr.mxu1 %v784_v8  ;;  %v849_v29 = vld [vmem:[#allocation5] sm:$0xf]  ;;  %v860_v33 = vld [vmem:[#allocation7] sm:$0xf]  ;;  %v874_v37 = vld [vmem:[#allocation2 + $0x28] sm:$0xff] }
  0x2f   :  { %138 = vmatpush1.msra.mxu0 %v788_v9  ;;  %220 = vmatpush1.msra.mxu1 %v788_v9  ;;  %v282_v32 = vmul.f32 %v849_v29, %v849_v29  ;;  %v365_v35 = vmul.f32 %v860_v33, %v860_v33  ;;  %v870_v36 = vmul.f32 %v860_v33, %v849_v29  ;;  %v881_v39 = vld [vmem:[#allocation2 + $0x20] sm:$0xff]  ;;  %v888_v41 = vld [vmem:[#allocation2 + $0x18] sm:$0xff]  ;;  %v892_v42 = vld [vmem:[#allocation2 + $0x10] sm:$0xff] }
  0x30   :  { %139 = vmatprep.subr.mxu0 %v792_v10  ;;  %221 = vmatprep.subr.mxu1 %v792_v10  ;;  %v896_v43 = vld [vmem:[#allocation2 + $0x8] sm:$0xff]  ;;  %v900_v44 = vld [vmem:[#allocation2] sm:$0xff]  ;;  %v904_v45 = vld [vmem:[#allocation2 + $0x1f8] sm:$0xff] }
  0x31   :  { %140 = vmatpush1.msra.mxu0 %v796_v11  ;;  %222 = vmatpush1.msra.mxu1 %v796_v11  ;;  %v877_v38 = vrot.slane %v282_v32, %v856_v31  ;;  %v884_v40 = vrot.slane %v365_v35, %v856_v31  ;;  %v908_v46 = vld [vmem:[#allocation2 + $0x1f0] sm:$0xff]  ;;  %v912_v47 = vld [vmem:[#allocation2 + $0x1e8] sm:$0xff]  ;;  %v916_v48 = vld [vmem:[#allocation2 + $0x1e0] sm:$0xff] }
  0x32   :  { %141 = vmatprep.subr.mxu0 %v800_v12  ;;  %223 = vmatprep.subr.mxu1 %v800_v12  ;;  %v920_v49 = vld [vmem:[#allocation2 + $0x1d8] sm:$0xff]  ;;  %v924_v50 = vld [vmem:[#allocation2 + $0x1d0] sm:$0xff]  ;;  %v928_v51 = vld [vmem:[#allocation2 + $0x1c8] sm:$0xff] }
  0x33   :  { %142 = vmatpush1.msra.mxu0 %v804_v13  ;;  %224 = vmatpush1.msra.mxu1 %v804_v13  ;;  %1279 = vst [vmem:[#allocation13_spill] sm:$0xff] %v877_v38  ;;  %1280 = vst [vmem:[#allocation14_spill] sm:$0xff] %v884_v40  ;;  %v932_v52 = vld [vmem:[#allocation2 + $0x1c0] sm:$0xff]  ;;  %v936_v53 = vld [vmem:[#allocation2 + $0x1b8] sm:$0xff]  ;;  %v125_v38 = vrot.slane %v849_v29, %v856_v31 }
  0x34   :  { %143 = vmatprep.subr.mxu0 %v808_v14  ;;  %225 = vmatprep.subr.mxu1 %v808_v14  ;;  %v940_v54 = vld [vmem:[#allocation2 + $0x1b0] sm:$0xff]  ;;  %v944_v55 = vld [vmem:[#allocation2 + $0x1a8] sm:$0xff]  ;;  %v948_v56 = vld [vmem:[#allocation2 + $0x1a0] sm:$0xff] }
  0x35   :  { %144 = vmatpush1.msra.mxu0 %v812_v15  ;;  %226 = vmatpush1.msra.mxu1 %v812_v15  ;;  %v952_v57 = vld [vmem:[#allocation2 + $0x198] sm:$0xff]  ;;  %v956_v58 = vld [vmem:[#allocation2 + $0x190] sm:$0xff]  ;;  %v960_v59 = vld [vmem:[#allocation2 + $0x188] sm:$0xff] }
  0x36   :  { %145 = vmatprep.subr.mxu0 %v816_v16  ;;  %227 = vmatprep.subr.mxu1 %v816_v16  ;;  %v964_v60 = vld [vmem:[#allocation2 + $0x180] sm:$0xff]  ;;  %v968_v61 = vld [vmem:[#allocation2 + $0x178] sm:$0xff]  ;;  %v972_v62 = vld [vmem:[#allocation2 + $0x170] sm:$0xff] }
  0x37   :  { %146 = vmatpush1.msra.mxu0 %v820_v20  ;;  %228 = vmatpush1.msra.mxu1 %v820_v20  ;;  %v976_v63 = vld [vmem:[#allocation2 + $0x168] sm:$0xff]  ;;  %v980_v17 = vld [vmem:[#allocation2 + $0x160] sm:$0xff]  ;;  %v984_v18 = vld [vmem:[#allocation2 + $0x158] sm:$0xff] }
  0x38   :  { %147 = vmatprep.subr.mxu0 %v824_v21  ;;  %229 = vmatprep.subr.mxu1 %v824_v21  ;;  %1281 = vst [vmem:[#allocation15_spill] sm:$0xff] %v984_v18  ;;  %v988_v24 = vld [vmem:[#allocation2 + $0x150] sm:$0xff]  ;;  %v992_v32 = vld [vmem:[#allocation2 + $0x148] sm:$0xff]  ;;  %v996_v35 = vld [vmem:[#allocation2 + $0x140] sm:$0xff] }
  0x39   :  { %148 = vmatpush1.msra.mxu0 %v828_v22  ;;  %230 = vmatpush1.msra.mxu1 %v828_v22  ;;  %1282 = vst [vmem:[#allocation16_spill] sm:$0xff] %v988_v24  ;;  %1283 = vst [vmem:[#allocation17_spill] sm:$0xff] %v992_v32  ;;  %v1000_v19 = vld [vmem:[#allocation2 + $0x138] sm:$0xff]  ;;  %v1004_v25 = vld [vmem:[#allocation2 + $0x130] sm:$0xff] }
  0x3a   :  { %149 = vmatprep.subr.mxu0 %v832_v23  ;;  %231 = vmatprep.subr.mxu1 %v832_v23  ;;  %1284 = vst [vmem:[#allocation18_spill] sm:$0xff] %v996_v35  ;;  %1285 = vst [vmem:[#allocation19_spill] sm:$0xff] %v1000_v19  ;;  %v1008_v40 = vld [vmem:[#allocation2 + $0x128] sm:$0xff]  ;;  %v1024_v29 = vld [vmem:[#allocation2 + $0x110] sm:$0xff] }
  0x3b   :  { %150 = vmatpush1.msra.mxu0 %v839_v26  ;;  %232 = vmatpush1.msra.mxu1 %v839_v26  ;;  %1286 = vst [vmem:[#allocation20_spill] sm:$0xff] %v1004_v25 }
  0x3c   :  { %151 = vmatprep.subr.mxu0 %v843_v27  ;;  %233 = vmatprep.subr.mxu1 %v843_v27 }
  0x3d   :  { %152 = vmatpush1.msra.mxu0 %v847_v28  ;;  %234 = vmatpush1.msra.mxu1 %v847_v28 }
  0x3e   :  { %153 = vmatprep.subr.mxu0 %v853_v30  ;;  %235 = vmatprep.subr.mxu1 %v853_v30 }
  0x3f   :  { %154 = vmatpush1.msra.mxu0 %v864_v34  ;;  %236 = vmatpush1.msra.mxu1 %v864_v34 }
  0x40   :  { %155 = vmatprep.subr.mxu0 %v874_v37  ;;  %237 = vmatprep.subr.mxu1 %v874_v37 }
  0x41   :  { %156 = vmatpush1.msra.mxu0 %v881_v39  ;;  %238 = vmatpush1.msra.mxu1 %v881_v39 }
  0x42   :  { %157 = vmatprep.subr.mxu0 %v888_v41  ;;  %239 = vmatprep.subr.mxu1 %v888_v41 }
  0x43   :  { %158 = vmatpush1.msra.mxu0 %v892_v42  ;;  %240 = vmatpush1.msra.mxu1 %v892_v42 }
  0x44   :  { %159 = vmatprep.subr.mxu0 %v896_v43  ;;  %241 = vmatprep.subr.mxu1 %v896_v43 }
  0x45   :  { %160 = vmatpush1.msra.mxu0 %v900_v44  ;;  %242 = vmatpush1.msra.mxu1 %v900_v44 }
  0x46   :  { %161 = vmatprep.subr.mxu0 %v904_v45  ;;  %243 = vmatprep.subr.mxu1 %v904_v45 }
  0x47   :  { %162 = vmatpush2.msra.mxu0 %v908_v46  ;;  %244 = vmatpush2.msra.mxu1 %v908_v46 }
  0x48   :  { %163 = vmatprep.subr.mxu0 %v912_v47  ;;  %245 = vmatprep.subr.mxu1 %v912_v47 }
  0x49   :  { %164 = vmatpush2.msra.mxu0 %v916_v48  ;;  %246 = vmatpush2.msra.mxu1 %v916_v48 }
  0x4a   :  { %165 = vmatprep.subr.mxu0 %v920_v49  ;;  %247 = vmatprep.subr.mxu1 %v920_v49 }
  0x4b   :  { %166 = vmatpush2.msra.mxu0 %v924_v50  ;;  %248 = vmatpush2.msra.mxu1 %v924_v50 }
  0x4c   :  { %167 = vmatprep.subr.mxu0 %v928_v51  ;;  %249 = vmatprep.subr.mxu1 %v928_v51 }
  0x4d   :  { %168 = vmatpush2.msra.mxu0 %v932_v52  ;;  %250 = vmatpush2.msra.mxu1 %v932_v52 }
  0x4e   :  { %169 = vmatprep.subr.mxu0 %v936_v53  ;;  %251 = vmatprep.subr.mxu1 %v936_v53 }
  0x4f   :  { %170 = vmatpush2.msra.mxu0 %v940_v54  ;;  %252 = vmatpush2.msra.mxu1 %v940_v54 }
  0x50   :  { %171 = vmatprep.subr.mxu0 %v944_v55  ;;  %253 = vmatprep.subr.mxu1 %v944_v55 }
  0x51   :  { %172 = vmatpush2.msra.mxu0 %v948_v56  ;;  %254 = vmatpush2.msra.mxu1 %v948_v56 }
  0x52   :  { %173 = vmatprep.subr.mxu0 %v952_v57  ;;  %255 = vmatprep.subr.mxu1 %v952_v57 }
  0x53   :  { %174 = vmatpush2.msra.mxu0 %v956_v58  ;;  %256 = vmatpush2.msra.mxu1 %v956_v58 }
  0x54   :  { %175 = vmatprep.subr.mxu0 %v960_v59  ;;  %257 = vmatprep.subr.mxu1 %v960_v59 }
  0x55   :  { %176 = vmatpush2.msra.mxu0 %v964_v60  ;;  %258 = vmatpush2.msra.mxu1 %v964_v60 }
  0x56   :  { %177 = vmatprep.subr.mxu0 %v968_v61  ;;  %259 = vmatprep.subr.mxu1 %v968_v61 }
  0x57   :  { %178 = vmatpush2.msra.mxu0 %v972_v62  ;;  %260 = vmatpush2.msra.mxu1 %v972_v62 }
  0x58   :  { %179 = vmatprep.subr.mxu0 %v976_v63  ;;  %261 = vmatprep.subr.mxu1 %v976_v63 }
  0x59   :  { %180 = vmatpush2.msra.mxu0 %v980_v17  ;;  %262 = vmatpush2.msra.mxu1 %v980_v17 }
  0x5a   :  { %181 = vmatprep.subr.mxu0 %v984_v18  ;;  %263 = vmatprep.subr.mxu1 %v984_v18  ;;  %v1020_v18 = vld [vmem:[#allocation2 + $0x118] sm:$0xff] }
  0x5b   :  { %182 = vmatpush2.msra.mxu0 %v988_v24  ;;  %264 = vmatpush2.msra.mxu1 %v988_v24  ;;  %v1014_v24 = vld [vmem:[#allocation2 + $0x120] sm:$0xff] }
  0x5c   :  { %183 = vmatprep.subr.mxu0 %v992_v32  ;;  %265 = vmatprep.subr.mxu1 %v992_v32  ;;  %1287 = vst [vmem:[#allocation21_spill] sm:$0xff] %v1014_v24  ;;  %v207_v32 = vrot.slane %v860_v33, %v856_v31  ;;  %v1032_v33 = vld [vmem:[#allocation2 + $0x100] sm:$0xff] }
  0x5d   :  { %184 = vmatpush2.msra.mxu0 %v996_v35  ;;  %266 = vmatpush2.msra.mxu1 %v996_v35  ;;  %v126_v35 = vcombine.high %v125_v38, %v125_v38 }
  0x5e   :  { %185 = vmatprep.subr.mxu0 %v1000_v19  ;;  %267 = vmatprep.subr.mxu1 %v1000_v19  ;;  %v1028_v19 = vld [vmem:[#allocation2 + $0x108] sm:$0xff] }
  0x5f   :  { %186 = vmatpush2.msra.mxu0 %v1004_v25  ;;  %268 = vmatpush2.msra.mxu1 %v1004_v25  ;;  %v208_v25 = vcombine.high %v207_v32, %v207_v32 }
  0x60   :  { %187 = vmatprep.subr.mxu0 %v1008_v40  ;;  %269 = vmatprep.subr.mxu1 %v1008_v40 }
  0x61   :  { %188 = vmatpush2.msra.mxu0 %v1014_v24  ;;  %270 = vmatpush2.msra.mxu1 %v1014_v24  ;;  %v1041_v24 = vrot.slane %v870_v36, %v856_v31  ;;  %v1289_v31 = vld [vmem:[#allocation16_spill] sm:$0xff]  ;;  %v1290_v36 = vld [vmem:[#allocation17_spill] sm:$0xff] }
  0x62   :  { %189 = vmatprep.subr.mxu0 %v1020_v18  ;;  %271 = vmatprep.subr.mxu1 %v1020_v18 }
  0x63   :  { %190 = vmatpush2.msra.mxu0 %v1024_v29  ;;  %272 = vmatpush2.msra.mxu1 %v1024_v29 }
  0x64   :  { %191 = vmatprep.subr.mxu0 %v1028_v19  ;;  %273 = vmatprep.subr.mxu1 %v1028_v19 }
  0x65   :  { %192 = vmatpush2.msra.mxu0 %v1032_v33  ;;  %193 = vmatprep.mubr.f32.mxu0 %v126_v35  ;;  %v1293_v35 = vld [vmem:[#allocation20_spill] sm:$0xff] }
  0x66   :  { %274 = vmatpush2.msra.mxu1 %v1032_v33  ;;  %275 = vmatprep.mubr.f32.mxu1 %v208_v25  ;;  %v1288_v25 = vld [vmem:[#allocation15_spill] sm:$0xff] }
  0x67   :  { %194 = vmatmul.mubr.f32.vlgmr.msra.gmra.mxu0 %v125_v38  ;;  %276 = vmatmul.mubr.f32.vlgmr.msra.gmra.mxu1 %v207_v32  ;;  %v1291_v38 = vld [vmem:[#allocation18_spill] sm:$0xff]  ;;  %v1292_v32 = vld [vmem:[#allocation19_spill] sm:$0xff] }
  0x68   :  { %294 = vmatprep.subr.mxu0 %v756_v0  ;;  %377 = vmatprep.subr.mxu1 %v756_v0 }
  0x69   :  { %295 = vmatpush1.msra.mxu0 %v758_v1  ;;  %378 = vmatpush1.msra.mxu1 %v758_v1 }
  0x6a   :  { %296 = vmatprep.subr.mxu0 %v760_v2  ;;  %379 = vmatprep.subr.mxu1 %v760_v2 }
  0x6b   :  { %297 = vmatpush1.msra.mxu0 %v764_v3  ;;  %380 = vmatpush1.msra.mxu1 %v764_v3 }
  0x6c   :  { %298 = vmatprep.subr.mxu0 %v768_v4  ;;  %381 = vmatprep.subr.mxu1 %v768_v4 }
  0x6d   :  { %299 = vmatpush1.msra.mxu0 %v772_v5  ;;  %382 = vmatpush1.msra.mxu1 %v772_v5 }
  0x6e   :  { %300 = vmatprep.subr.mxu0 %v776_v6  ;;  %383 = vmatprep.subr.mxu1 %v776_v6 }
  0x6f   :  { %301 = vmatpush1.msra.mxu0 %v780_v7  ;;  %384 = vmatpush1.msra.mxu1 %v780_v7 }
  0x70   :  { %302 = vmatprep.subr.mxu0 %v784_v8  ;;  %385 = vmatprep.subr.mxu1 %v784_v8 }
  0x71   :  { %303 = vmatpush1.msra.mxu0 %v788_v9  ;;  %386 = vmatpush1.msra.mxu1 %v788_v9 }
  0x72   :  { %304 = vmatprep.subr.mxu0 %v792_v10  ;;  %387 = vmatprep.subr.mxu1 %v792_v10 }
  0x73   :  { %305 = vmatpush1.msra.mxu0 %v796_v11  ;;  %388 = vmatpush1.msra.mxu1 %v796_v11 }
  0x74   :  { %306 = vmatprep.subr.mxu0 %v800_v12  ;;  %389 = vmatprep.subr.mxu1 %v800_v12 }
  0x75   :  { %307 = vmatpush1.msra.mxu0 %v804_v13  ;;  %390 = vmatpush1.msra.mxu1 %v804_v13 }
  0x76   :  { %308 = vmatprep.subr.mxu0 %v808_v14  ;;  %391 = vmatprep.subr.mxu1 %v808_v14 }
  0x77   :  { %309 = vmatpush1.msra.mxu0 %v812_v15  ;;  %392 = vmatpush1.msra.mxu1 %v812_v15 }
  0x78   :  { %310 = vmatprep.subr.mxu0 %v816_v16  ;;  %393 = vmatprep.subr.mxu1 %v816_v16 }
  0x79   :  { %311 = vmatpush1.msra.mxu0 %v820_v20  ;;  %394 = vmatpush1.msra.mxu1 %v820_v20 }
  0x7a   :  { %312 = vmatprep.subr.mxu0 %v824_v21  ;;  %395 = vmatprep.subr.mxu1 %v824_v21 }
  0x7b   :  { %313 = vmatpush1.msra.mxu0 %v828_v22  ;;  %396 = vmatpush1.msra.mxu1 %v828_v22 }
  0x7c   :  { %314 = vmatprep.subr.mxu0 %v832_v23  ;;  %397 = vmatprep.subr.mxu1 %v832_v23 }
  0x7d   :  { %315 = vmatpush1.msra.mxu0 %v839_v26  ;;  %398 = vmatpush1.msra.mxu1 %v839_v26 }
  0x7e   :  { %316 = vmatprep.subr.mxu0 %v843_v27  ;;  %399 = vmatprep.subr.mxu1 %v843_v27 }
  0x7f   :  { %317 = vmatpush1.msra.mxu0 %v847_v28  ;;  %400 = vmatpush1.msra.mxu1 %v847_v28 }
  0x80   :  { %318 = vmatprep.subr.mxu0 %v853_v30  ;;  %401 = vmatprep.subr.mxu1 %v853_v30 }
  0x81   :  { %319 = vmatpush1.msra.mxu0 %v864_v34  ;;  %402 = vmatpush1.msra.mxu1 %v864_v34 }
  0x82   :  { %320 = vmatprep.subr.mxu0 %v874_v37  ;;  %403 = vmatprep.subr.mxu1 %v874_v37 }
  0x83   :  { %321 = vmatpush1.msra.mxu0 %v881_v39  ;;  %404 = vmatpush1.msra.mxu1 %v881_v39 }
  0x84   :  { %322 = vmatprep.subr.mxu0 %v888_v41  ;;  %405 = vmatprep.subr.mxu1 %v888_v41 }
  0x85   :  { %323 = vmatpush1.msra.mxu0 %v892_v42  ;;  %406 = vmatpush1.msra.mxu1 %v892_v42 }
  0x86   :  { %324 = vmatprep.subr.mxu0 %v896_v43  ;;  %407 = vmatprep.subr.mxu1 %v896_v43 }
  0x87   :  { %325 = vmatpush1.msra.mxu0 %v900_v44  ;;  %408 = vmatpush1.msra.mxu1 %v900_v44 }
  0x88   :  { %326 = vmatprep.subr.mxu0 %v904_v45  ;;  %409 = vmatprep.subr.mxu1 %v904_v45 }
  0x89   :  { %327 = vmatpush2.msra.mxu0 %v908_v46  ;;  %410 = vmatpush2.msra.mxu1 %v908_v46 }
  0x8a   :  { %328 = vmatprep.subr.mxu0 %v912_v47  ;;  %411 = vmatprep.subr.mxu1 %v912_v47 }
  0x8b   :  { %329 = vmatpush2.msra.mxu0 %v916_v48  ;;  %412 = vmatpush2.msra.mxu1 %v916_v48 }
  0x8c   :  { %330 = vmatprep.subr.mxu0 %v920_v49  ;;  %413 = vmatprep.subr.mxu1 %v920_v49 }
  0x8d   :  { %331 = vmatpush2.msra.mxu0 %v924_v50  ;;  %414 = vmatpush2.msra.mxu1 %v924_v50 }
  0x8e   :  { %332 = vmatprep.subr.mxu0 %v928_v51  ;;  %415 = vmatprep.subr.mxu1 %v928_v51 }
  0x8f   :  { %333 = vmatpush2.msra.mxu0 %v932_v52  ;;  %416 = vmatpush2.msra.mxu1 %v932_v52 }
  0x90   :  { %334 = vmatprep.subr.mxu0 %v936_v53  ;;  %417 = vmatprep.subr.mxu1 %v936_v53 }
  0x91   :  { %335 = vmatpush2.msra.mxu0 %v940_v54  ;;  %418 = vmatpush2.msra.mxu1 %v940_v54 }
  0x92   :  { %336 = vmatprep.subr.mxu0 %v944_v55  ;;  %419 = vmatprep.subr.mxu1 %v944_v55 }
  0x93   :  { %337 = vmatpush2.msra.mxu0 %v948_v56  ;;  %420 = vmatpush2.msra.mxu1 %v948_v56 }
  0x94   :  { %338 = vmatprep.subr.mxu0 %v952_v57  ;;  %421 = vmatprep.subr.mxu1 %v952_v57 }
  0x95   :  { %339 = vmatpush2.msra.mxu0 %v956_v58  ;;  %422 = vmatpush2.msra.mxu1 %v956_v58 }
  0x96   :  { %340 = vmatprep.subr.mxu0 %v960_v59  ;;  %423 = vmatprep.subr.mxu1 %v960_v59 }
  0x97   :  { %341 = vmatpush2.msra.mxu0 %v964_v60  ;;  %424 = vmatpush2.msra.mxu1 %v964_v60 }
  0x98   :  { %342 = vmatprep.subr.mxu0 %v968_v61  ;;  %425 = vmatprep.subr.mxu1 %v968_v61 }
  0x99   :  { %343 = vmatpush2.msra.mxu0 %v972_v62  ;;  %426 = vmatpush2.msra.mxu1 %v972_v62 }
  0x9a   :  { %344 = vmatprep.subr.mxu0 %v976_v63  ;;  %427 = vmatprep.subr.mxu1 %v976_v63 }
  0x9b   :  { %345 = vmatpush2.msra.mxu0 %v980_v17  ;;  %428 = vmatpush2.msra.mxu1 %v980_v17 }
  0x9c   :  { %346 = vmatprep.subr.mxu0 %v1288_v25  ;;  %429 = vmatprep.subr.mxu1 %v1288_v25 }
  0x9d   :  { %347 = vmatpush2.msra.mxu0 %v1289_v31  ;;  %430 = vmatpush2.msra.mxu1 %v1289_v31  ;;  %v1294_v31 = vld [vmem:[#allocation21_spill] sm:$0xff] }
  0x9e   :  { %348 = vmatprep.subr.mxu0 %v1290_v36  ;;  %431 = vmatprep.subr.mxu1 %v1290_v36  ;;  %v1295_v36 = vld [vmem:[#allocation13_spill] sm:$0xff] }
  0x9f   :  { %349 = vmatpush2.msra.mxu0 %v1291_v38  ;;  %432 = vmatpush2.msra.mxu1 %v1291_v38  ;;  %v291_v25 = vcombine.high %v1295_v36, %v1295_v36 }
  0xa0   :  { %350 = vmatprep.subr.mxu0 %v1292_v32  ;;  %433 = vmatprep.subr.mxu1 %v1292_v32  ;;  %v1296_v32 = vld [vmem:[#allocation14_spill] sm:$0xff] }
  0xa1   :  { %351 = vmatpush2.msra.mxu0 %v1293_v35  ;;  %434 = vmatpush2.msra.mxu1 %v1293_v35  ;;  %v374_v38 = vcombine.high %v1296_v32, %v1296_v32 }
  0xa2   :  { %352 = vmatprep.subr.mxu0 %v1008_v40  ;;  %435 = vmatprep.subr.mxu1 %v1008_v40 }
  0xa3   :  { %353 = vmatpush2.msra.mxu0 %v1294_v31  ;;  %436 = vmatpush2.msra.mxu1 %v1294_v31  ;;  %v457_v31 = vcombine.high %v1041_v24, %v1041_v24 }
  0xa4   :  { %354 = vmatprep.subr.mxu0 %v1020_v18  ;;  %437 = vmatprep.subr.mxu1 %v1020_v18 }
  0xa5   :  { %355 = vmatpush2.msra.mxu0 %v1024_v29  ;;  %438 = vmatpush2.msra.mxu1 %v1024_v29 }
  0xa6   :  { %356 = vmatprep.subr.mxu0 %v1028_v19  ;;  %439 = vmatprep.subr.mxu1 %v1028_v19 }
  0xa7   :  { %357 = vmatpush2.msra.mxu0 %v1032_v33  ;;  %358 = vmatprep.mubr.f32.mxu0 %v291_v25 }
  0xa8   :  { %440 = vmatpush2.msra.mxu1 %v1032_v33  ;;  %441 = vmatprep.mubr.f32.mxu1 %v374_v38 }
  0xa9   :  { %359 = vmatmul.mubr.f32.vlgmr.msra.gmra.mxu0 %v1295_v36  ;;  %442 = vmatmul.mubr.f32.vlgmr.msra.gmra.mxu1 %v1296_v32 }
  0xaa   :  { %460 = vmatprep.subr.mxu0 %v756_v0  ;;  %524 = vmatprep.mubr.f32.mxu0 %v457_v31  ;;  %v1297_v0 = vld [vmem:[#allocation15_spill] sm:$0xff]  ;;  %v725_v31 = vmov 1966171168  }
  0xab   :  { %461 = vmatpush1.msra.mxu0 %v758_v1  ;;  %v1298_v1 = vld [vmem:[#allocation16_spill] sm:$0xff]  ;;  %v586_v36 = vunpack.c.l.s4 %v725_v31 }
  0xac   :  { %462 = vmatprep.subr.mxu0 %v760_v2  ;;  %v1299_v2 = vld [vmem:[#allocation17_spill] sm:$0xff] }
  0xad   :  { %463 = vmatpush1.msra.mxu0 %v764_v3  ;;  %v1300_v3 = vld [vmem:[#allocation18_spill] sm:$0xff] }
  0xae   :  { %464 = vmatprep.subr.mxu0 %v768_v4  ;;  %v1301_v4 = vld [vmem:[#allocation19_spill] sm:$0xff] }
  0xaf   :  { %465 = vmatpush1.msra.mxu0 %v772_v5  ;;  %v1302_v5 = vld [vmem:[#allocation21_spill] sm:$0xff] }
  0xb0   :  { %466 = vmatprep.subr.mxu0 %v776_v6 }
  0xb1   :  { %467 = vmatpush1.msra.mxu0 %v780_v7 }
  0xb2   :  { %468 = vmatprep.subr.mxu0 %v784_v8 }
  0xb3   :  { %469 = vmatpush1.msra.mxu0 %v788_v9 }
  0xb4   :  { %470 = vmatprep.subr.mxu0 %v792_v10 }
  0xb5   :  { %471 = vmatpush1.msra.mxu0 %v796_v11 }
  0xb6   :  { %472 = vmatprep.subr.mxu0 %v800_v12 }
  0xb7   :  { %473 = vmatpush1.msra.mxu0 %v804_v13 }
  0xb8   :  { %474 = vmatprep.subr.mxu0 %v808_v14 }
  0xb9   :  { %475 = vmatpush1.msra.mxu0 %v812_v15 }
  0xba   :  { %476 = vmatprep.subr.mxu0 %v816_v16 }
  0xbb   :  { %477 = vmatpush1.msra.mxu0 %v820_v20 }
  0xbc   :  { %478 = vmatprep.subr.mxu0 %v824_v21 }
  0xbd   :  { %479 = vmatpush1.msra.mxu0 %v828_v22 }
  0xbe   :  { %480 = vmatprep.subr.mxu0 %v832_v23 }
  0xbf   :  { %481 = vmatpush1.msra.mxu0 %v839_v26 }
  0xc0   :  { %482 = vmatprep.subr.mxu0 %v843_v27 }
  0xc1   :  { %483 = vmatpush1.msra.mxu0 %v847_v28 }
  0xc2   :  { %484 = vmatprep.subr.mxu0 %v853_v30 }
  0xc3   :  { %485 = vmatpush1.msra.mxu0 %v864_v34 }
  0xc4   :  { %486 = vmatprep.subr.mxu0 %v874_v37 }
  0xc5   :  { %487 = vmatpush1.msra.mxu0 %v881_v39 }
  0xc6   :  { %488 = vmatprep.subr.mxu0 %v888_v41 }
  0xc7   :  { %489 = vmatpush1.msra.mxu0 %v892_v42 }
  0xc8   :  { %490 = vmatprep.subr.mxu0 %v896_v43 }
  0xc9   :  { %491 = vmatpush1.msra.mxu0 %v900_v44 }
  0xca   :  { %492 = vmatprep.subr.mxu0 %v904_v45 }
  0xcb   :  { %493 = vmatpush2.msra.mxu0 %v908_v46 }
  0xcc   :  { %494 = vmatprep.subr.mxu0 %v912_v47 }
  0xcd   :  { %495 = vmatpush2.msra.mxu0 %v916_v48 }
  0xce   :  { %496 = vmatprep.subr.mxu0 %v920_v49 }
  0xcf   :  { %497 = vmatpush2.msra.mxu0 %v924_v50 }
  0xd0   :  { %498 = vmatprep.subr.mxu0 %v928_v51 }
  0xd1   :  { %499 = vmatpush2.msra.mxu0 %v932_v52 }
  0xd2   :  { %500 = vmatprep.subr.mxu0 %v936_v53 }
  0xd3   :  { %501 = vmatpush2.msra.mxu0 %v940_v54 }
  0xd4   :  { %502 = vmatprep.subr.mxu0 %v944_v55 }
  0xd5   :  { %503 = vmatpush2.msra.mxu0 %v948_v56 }
  0xd6   :  { %504 = vmatprep.subr.mxu0 %v952_v57 }
  0xd7   :  { %505 = vmatpush2.msra.mxu0 %v956_v58 }
  0xd8   :  { %506 = vmatprep.subr.mxu0 %v960_v59 }
  0xd9   :  { %507 = vmatpush2.msra.mxu0 %v964_v60 }
  0xda   :  { %508 = vmatprep.subr.mxu0 %v968_v61 }
  0xdb   :  { %509 = vmatpush2.msra.mxu0 %v972_v62 }
  0xdc   :  { %510 = vmatprep.subr.mxu0 %v976_v63 }
  0xdd   :  { %511 = vmatpush2.msra.mxu0 %v980_v17 }
  0xde   :  { %512 = vmatprep.subr.mxu0 %v1297_v0 }
  0xdf   :  { %513 = vmatpush2.msra.mxu0 %v1298_v1  ;;  %v587_v1 = vunpack.c.0.s8 %v586_v36 }
  0xe0   :  { %514 = vmatprep.subr.mxu0 %v1299_v2 }
  0xe1   :  { %515 = vmatpush2.msra.mxu0 %v1300_v3 }
  0xe2   :  { %516 = vmatprep.subr.mxu0 %v1301_v4 }
  0xe3   :  { %517 = vmatpush2.msra.mxu0 %v1293_v35 }
  0xe4   :  { %518 = vmatprep.subr.mxu0 %v1008_v40 }
  0xe5   :  { %519 = vmatpush2.msra.mxu0 %v1302_v5  ;;  %v1303_v5 = vld [vmem:[#allocation12_spill] sm:$0xff] }
  0xe6   :  { %520 = vmatprep.subr.mxu0 %v1020_v18 }
  0xe7   :  { %521 = vmatpush2.msra.mxu0 %v1024_v29 }
  0xe8   :  { %522 = vmatprep.subr.mxu0 %v1028_v19 }
  0xe9   :  { %523 = vmatpush2.msra.mxu0 %v1032_v33 }
  0xea   :  { %525 = vmatmul.mubr.f32.vlgmr.msra.gmra.mxu0 %v1041_v24 }
 0x127   :  { %v195_v6 = vpop.f32.mrf.mxu0  ;;  %v277_v7 = vpop.f32.mrf.mxu1 }
 0x128   :  { %v531_v12 = vmul.f32 %v195_v6, %v195_v6  ;;  %v533_v13 = vmul.f32 %v277_v7, %v277_v7  ;;  %v535_v43 = vmul.f32 %v277_v7, %v195_v6  ;;  %v590_v6 = vsub.s32 %v587_v1, %v1303_v5 }
 0x129   :  { %v197_v8 = vpop.f32.mrf.mxu0  ;;  %v279_v9 = vpop.f32.mrf.mxu1 }
 0x12a   :  { %v532_v16 = vmul.f32 %v197_v8, %v197_v8  ;;  %v534_v20 = vmul.f32 %v279_v9, %v279_v9  ;;  %v553_v27 = vadd.f32 %v533_v13, %v531_v12  ;;  %v536_v44 = vmul.f32 %v279_v9, %v197_v8 }
 0x12b   :  { %v543_v46 = vmul.f32 2.0, %v535_v43  ;;  %v1304_v9 = vlaneseq }
 0x12c   :  { %v554_v30 = vadd.f32 %v534_v20, %v532_v16  ;;  %v555_v37 = vadd.f32 0.0001, %v553_v27  ;;  %v544_v49 = vmul.f32 2.0, %v536_v44 }
 0x12d   :  { %v545_v52 = vadd.f32 0.0001, %v543_v46  ;;  %vm602_vm1 = vcmp.lt.s32.totalorder %v1304_v9, 256 }
 0x12e   :  { %v556_v40 = vadd.f32 0.0001, %v554_v30  ;;  %v546_v55 = vadd.f32 0.0001, %v544_v49 }
 0x169   :  { %v360_v10 = vpop.f32.mrf.mxu0  ;;  %v443_v11 = vpop.f32.mrf.mxu1 }
 0x16a   :  { %v537_v21 = vsub.f32 %v360_v10, %v531_v12  ;;  %v539_v22 = vsub.f32 %v443_v11, %v533_v13 }
 0x16b   :  { %v362_v14 = vpop.f32.mrf.mxu0  ;;  %v445_v15 = vpop.f32.mrf.mxu1 }
 0x16c   :  { %v538_v23 = vsub.f32 %v362_v14, %v532_v16  ;;  %v540_v19 = vsub.f32 %v445_v15, %v534_v20  ;;  %v557_v26 = vadd.f32 %v539_v22, %v537_v21 }
 0x16e   :  { %v558_v28 = vadd.f32 %v540_v19, %v538_v23  ;;  %v559_v34 = vadd.f32 0.0009, %v557_v26 }
 0x170   :  { %v560_v39 = vadd.f32 0.0009, %v558_v28  ;;  %v561_v41 = vmul.f32 %v559_v34, %v555_v37 }
 0x172   :  { %v562_v42 = vmul.f32 %v560_v39, %v556_v40  ;;  %629 = vrcp.f32 %v561_v41 }
 0x174   :  { %631 = vrcp.f32 %v562_v42 }
 0x17f   :  { %v630_v58 = vpop.eup %629 }
 0x181   :  { %v632_v61 = vpop.eup %631 }
 0x1aa   :  { %v526_v45 = vpop.f32.mrf.mxu0 }
 0x1ab   :  { %v541_v47 = vsub.f32 %v526_v45, %v535_v43 }
 0x1ac   :  { %v528_v48 = vpop.f32.mrf.mxu0 }
 0x1ad   :  { %v547_v50 = vmul.f32 2.0, %v541_v47  ;;  %v542_v51 = vsub.f32 %v528_v48, %v536_v44 }
 0x1af   :  { %v549_v53 = vadd.f32 0.0009, %v547_v50  ;;  %v548_v54 = vmul.f32 2.0, %v542_v51 }
 0x1b1   :  { %v551_v56 = vmul.f32 %v549_v53, %v545_v52  ;;  %v550_v57 = vadd.f32 0.0009, %v548_v54 }
 0x1b3   :  { %v565_v59 = vmul.f32 %v630_v58, %v551_v56  ;;  %v552_v60 = vmul.f32 %v550_v57, %v546_v55 }
 0x1b5   :  { %v568_v62 = vsel %vm567_vm0, %v565_v59, 0.0  ;;  %v566_v63 = vmul.f32 %v632_v61, %v552_v60 }
 0x1b6   :  { %v569_v17 = vrot.slane %v568_v62, 4 }
 0x1b7   :  { %v575_v18 = vsel %vm567_vm0, %v566_v63, 0.0 }
 0x1b8   :  { %v570_v24 = vadd.f32 %v569_v17, %v568_v62  ;;  %v576_v29 = vrot.slane %v575_v18, 4 }
 0x1ba   :  { %v571_v33 = vrot.slane %v570_v24, 2  ;;  %v577_v25 = vadd.f32 %v576_v29, %v575_v18 }
 0x1bc   :  { %v572_v38 = vadd.f32 %v571_v33, %v570_v24  ;;  %v578_v32 = vrot.slane %v577_v25, 2 }
 0x1be   :  { %v573_v35 = vrot.slane %v572_v38, 1  ;;  %v579_v0 = vadd.f32 %v578_v32, %v577_v25 }
 0x1c0   :  { %v580_v2 = vrot.slane %v579_v0, 1  ;;  %v574_v3 = vadd.f32 %v573_v35, %v572_v38 }
 0x1c2   :  { %v581_v4 = vadd.f32 %v580_v2, %v579_v0 }
 0x1c4   :  { %v584_v7 = vcombine.low %v574_v3, %v581_v4 }
 0x1c6   :  { %v591_v8 = vrot.slane %v584_v7, %v590_v6 }
 0x1c8   :  { %v598_v10 = vrot.slane %v591_v8, %v590_v6 }
 0x1ca   :  { %604 = vst.msk [vmem:[#allocation8] sm:$0x3] %vm602_vm1, %v598_v10 }
 0x1cb   :  { %704 = shalt.err (!%p701_p5)
}
 0x1cc   :  { %614 = dma.vmem_to_hbm [thread:$0]  %s612_s2, 32, %s1253_s3, [#allocation4]  }
 0x1cd   :  { %717 = dma.done.wait [#allocation4], 32  }
 0x1ce   :  { %718 = vsyncadd [#allocation4], 4294967264 }
 0x1cf   :  { %618 = vsyncpa [#allocation3], 1 }
 0x1d0   :  { %619 = vsyncpa [#allocation6], 1 }
 0x1d1   :  { %620 = vsyncpa [#allocation4], 1 }

</bundles_post_ra>
